<compile_context>
chip_gen: v7x
topology: tpu7x:2x2x1
jax: 0.10.0
libtpu: 0.0.40
codegen_flags: <defaults>
</compile_context>

<pallas_src>
import jax
import jax.numpy as jnp
from jax.experimental import pallas as pl
from jax.experimental.pallas import tpu as pltpu

IN_F = 512
OUT_F = 512


def _linear_hardsigmoid_kernel(x_ref, w_ref, b_ref, o_ref):
    # x_ref: (B, IN) f32    w_ref: (IN, OUT) bf16 (pre-transposed)
    # b_ref: (1, OUT) f32   (bias with the +3 already folded in)
    # o_ref: (B, OUT) f32
    x = x_ref[...].astype(jnp.bfloat16)          # tiny (2 KiB) cast; native MXU bf16 path
    y = jnp.dot(x, w_ref[...], preferred_element_type=jnp.float32)
    y = y + b_ref[...]                           # f32 epilogue
    o_ref[...] = (jnp.clip(y, 0.0, 6.0) * (1.0 / 6.0)).astype(o_ref.dtype)


def prepare_params(weight, bias):
    """One-time parameter prep (model-load analogue).

    weight: (OUT, IN) f32 PyTorch layout -> (IN, OUT) bf16
    bias:   (OUT,) f32                   -> (1, OUT) f32 with +3 folded in
    """
    w_t_bf16 = weight.T.astype(jnp.bfloat16)
    b3 = (bias + 3.0).reshape(1, OUT_F).astype(jnp.float32)
    return w_t_bf16, b3


def linear_hardsigmoid(x, w_t_bf16, b3):
    """x: (B, IN) f32; w_t_bf16: (IN, OUT) bf16; b3: (1, OUT) f32."""
    B = x.shape[0]

    cost = pl.CostEstimate(
        flops=2 * B * IN_F * OUT_F,
        transcendentals=0,
        bytes_accessed=(w_t_bf16.size * w_t_bf16.dtype.itemsize
                        + x.size * x.dtype.itemsize
                        + b3.size * b3.dtype.itemsize
                        + B * OUT_F * 4),
    )

    return pl.pallas_call(
        _linear_hardsigmoid_kernel,
        out_shape=jax.ShapeDtypeStruct((B, OUT_F), jnp.float32),
        grid_spec=pl.GridSpec(
            grid=(1,),  # single step: everything is resident, one weight DMA
            in_specs=[
                pl.BlockSpec((B, IN_F), lambda i: (0, 0)),
                pl.BlockSpec((IN_F, OUT_F), lambda i: (0, 0)),
                pl.BlockSpec((1, OUT_F), lambda i: (0, 0)),
            ],
            out_specs=pl.BlockSpec((B, OUT_F), lambda i: (0, 0)),
        ),
        compiler_params=pltpu.CompilerParams(
            dimension_semantics=("arbitrary",),
        ),
        cost_estimate=cost,
    )(x, w_t_bf16, b3)


if __name__ == "__main__":
    key = jax.random.PRNGKey(0)
    kx, kw, kb = jax.random.split(key, 3)

    # Deterministic parameters (matches nn.Linear(512, 512) shapes).
    bound = 1.0 / jnp.sqrt(IN_F)
    weight = jax.random.uniform(kw, (OUT_F, IN_F), jnp.float32, -bound, bound)
    bias = jax.random.uniform(kb, (OUT_F,), jnp.float32, -bound, bound)

    # Input matches the module's x1 = torch.randn(1, 512)
    x = jax.random.normal(kx, (1, IN_F), jnp.float32)

    # One-time parameter prep (bf16 cast + transpose + bias fold).
    w_t_bf16, b3 = prepare_params(weight, bias)

    out = linear_hardsigmoid(x, w_t_bf16, b3)
    out = jax.block_until_ready(out)

    # Reference checks in plain JAX.
    ref_f32 = jnp.clip(x @ weight.T + bias + 3.0, 0.0, 6.0) / 6.0
    assert out.shape == (1, OUT_F)
    # Loose check vs the full-f32 module semantics (bf16 weight quantization).
    assert jnp.allclose(out, ref_f32, atol=1e-2), "mismatch vs f32 reference"
    # Tight check vs a reference using the same bf16-quantized operands.
    ref_bf = jnp.clip(
        x.astype(jnp.bfloat16).astype(jnp.float32)
        @ w_t_bf16.astype(jnp.float32)
        + bias + 3.0, 0.0, 6.0) / 6.0
    assert jnp.allclose(out, ref_bf, atol=1e-4), "mismatch vs bf16 reference"

    print("KERNEL_OK")
</pallas_src>

<mosaic_0001>
module attributes {stable_mosaic.version = 11 : i64} {
  func.func @_linear_hardsigmoid_kernel(%arg0: i32, %arg1: memref<1x512xf32, #tpu.memory_space<vmem>>, %arg2: memref<512x512xbf16, #tpu.memory_space<vmem>>, %arg3: memref<1x512xf32, #tpu.memory_space<vmem>>, %arg4: memref<1x512xf32, #tpu.memory_space<vmem>>) attributes {dimension_semantics = [#tpu.dimension_semantics<arbitrary>], iteration_bounds = array<i64: 1>, scalar_prefetch = 0 : i64, scratch_operands = 0 : i64, tpu.core_type = #tpu.core_type<tc>, window_params = [{pipeline_mode = #tpu.pipeline_mode<synchronous>, transform_indices = @transform_0, window_bounds = array<i64: 1, 512>}, {pipeline_mode = #tpu.pipeline_mode<synchronous>, transform_indices = @transform_1, window_bounds = array<i64: 512, 512>}, {pipeline_mode = #tpu.pipeline_mode<synchronous>, transform_indices = @transform_2, window_bounds = array<i64: 1, 512>}, {pipeline_mode = #tpu.pipeline_mode<synchronous>, transform_indices = @transform_3, window_bounds = array<i64: 1, 512>}]} {
    %c0 = arith.constant 0 : index
    %c0_0 = arith.constant 0 : index
    %0 = vector.load %arg1[%c0, %c0_0] : memref<1x512xf32, #tpu.memory_space<vmem>>, vector<1x512xf32>
    %1 = arith.truncf %0 : vector<1x512xf32> to vector<1x512xbf16>
    %c0_1 = arith.constant 0 : index
    %c0_2 = arith.constant 0 : index
    %2 = vector.load %arg2[%c0_1, %c0_2] : memref<512x512xbf16, #tpu.memory_space<vmem>>, vector<512x512xbf16>
    %cst = arith.constant dense<0.000000e+00> : vector<1x512xf32>
    %3 = tpu.matmul %1, %2, %cst {dimension_numbers = #tpu.dot_dimension_numbers<[1], [0], [0], [1], [0, 0, 1, 1], [], []>} : vector<1x512xbf16>, vector<512x512xbf16>, vector<1x512xf32> -> vector<1x512xf32>
    %c0_3 = arith.constant 0 : index
    %c0_4 = arith.constant 0 : index
    %4 = vector.load %arg3[%c0_3, %c0_4] : memref<1x512xf32, #tpu.memory_space<vmem>>, vector<1x512xf32>
    %5 = arith.addf %3, %4 : vector<1x512xf32>
    %cst_5 = arith.constant 0.000000e+00 : f32
    %cst_6 = arith.constant 6.000000e+00 : f32
    %6 = vector.broadcast %cst_5 : f32 to vector<1x512xf32>
    %7 = arith.maximumf %6, %5 : vector<1x512xf32>
    %8 = vector.broadcast %cst_6 : f32 to vector<1x512xf32>
    %9 = arith.minimumf %8, %7 : vector<1x512xf32>
    %cst_7 = arith.constant 0.166666672 : f32
    %10 = vector.broadcast %cst_7 : f32 to vector<1x512xf32>
    %11 = arith.mulf %9, %10 : vector<1x512xf32>
    %c0_8 = arith.constant 0 : index
    %c0_9 = arith.constant 0 : index
    %12 = vector.load %arg4[%c0_8, %c0_9] : memref<1x512xf32, #tpu.memory_space<vmem>>, vector<1x512xf32>
    tpu.vector_store %arg4[%c0_8, %c0_9], %11 {strides = array<i32>} : memref<1x512xf32, #tpu.memory_space<vmem>>, vector<1x512xf32>,
    return
  }
  func.func @transform_0(%arg0: i32) -> (i32, i32) {
    %c0_i32 = arith.constant 0 : i32
    %c0_i32_0 = arith.constant 0 : i32
    %c0_i32_1 = arith.constant 0 : i32
    return %c0_i32, %c0_i32_0 : i32, i32
  }
  func.func @transform_1(%arg0: i32) -> (i32, i32) {
    %c0_i32 = arith.constant 0 : i32
    %c0_i32_0 = arith.constant 0 : i32
    %c0_i32_1 = arith.constant 0 : i32
    return %c0_i32, %c0_i32_0 : i32, i32
  }
  func.func @transform_2(%arg0: i32) -> (i32, i32) {
    %c0_i32 = arith.constant 0 : i32
    %c0_i32_0 = arith.constant 0 : i32
    %c0_i32_1 = arith.constant 0 : i32
    return %c0_i32, %c0_i32_0 : i32, i32
  }
  func.func @transform_3(%arg0: i32) -> (i32, i32) {
    %c0_i32 = arith.constant 0 : i32
    %c0_i32_0 = arith.constant 0 : i32
    %c0_i32_1 = arith.constant 0 : i32
    return %c0_i32, %c0_i32_0 : i32, i32
  }
}

</mosaic_0001>

<bundles_post_ra>
// kernel: tpu_custom_call.1
= control target key start
LH: loop header
LB: loop body
LE: loop exit
PB: predicated region body
PF: predicated region fallthrough
CT: control target
= control target key end

     0   :  { %8 = vsyncpa [#allocation3], 0  ;;  %s1592_s0 = inlined_call_operand.hbm [shape: f32[1,512], index: 0, kind: input, shape index: {}]   ;;  %s1593_s1 = inlined_call_operand.hbm [shape: bf16[512,512], index: 1, kind: input, shape index: {}]   ;;  %s1594_s2 = inlined_call_operand.vmem [shape: f32[1,512], index: 2, kind: input, shape index: {}]   ;;  %s1595_s3 = inlined_call_operand.hbm [shape: f32[1,512], index: 3, kind: output, shape index: {}]  }
   0x1   :  { %9 = vsyncpa [#allocation6], 0 }
   0x2   :  { %10 = vsyncpa [#allocation4], 0  ;;  %s1493_s12 = smov [#allocation2]   ;;  %s1494_s14 = smov [#allocation5]  }
   0x3   :  { %s17_s13 = sshll.u32 %s1493_s12, 4  ;;  %s26_s15 = sshll.u32 %s1494_s14, 4  ;;  %s18_s13 = int_to_ptr.vmem [resolvable:$true] %s17_s13  ;;  %s1519_s15 = int_to_ptr.vmem [resolvable:$true] %s26_s15 }
   0x4   :  { %s1421_s18 = scalar_lea.hbm %s1592_s0, 64 }
   0x5   :  { %p1422_p0 = scmp.ne.s32.totalorder %s1592_s0, %s1421_s18  ;;  %p1425_p1 = scmp.lt.u32.totalorder %s1421_s18, %s1592_s0 }
   0x7   :  { %p1427_p2 = pnand %p1425_p1, %p1422_p0 }
   0x9   :  { %1430 = shalt.err (!%p1427_p2)
}
   0xa   :  { %s1431_s23 = scalar_lea.vmem %s18_s13, 64  ;;  %p1436_p4 = scmp.lt.s32.totalorder %s18_s13, %s18_s13 }
   0xb   :  { %p1432_p3 = scmp.ne.s32.totalorder %s18_s13, %s1431_s23  ;;  %p1437_p5 = scmp.lt.s32.totalorder %s1431_s23, %s1431_s23 }
   0xd   :  { %p1438_p6 = por %p1437_p5, %p1436_p4 }
   0xf   :  { %p1439_p7 = pnand %p1438_p6, %p1432_p3 }
  0x11   :  { %1442 = shalt.err (!%p1439_p7)
}
  0x12   :  { %20 = dma.hbm_to_vmem [thread:$0]  %s1592_s0, 64, %s18_s13, [#allocation3]  }
  0x13   :  { %s1443_s28 = scalar_lea.hbm %s1593_s1, 16384 }
  0x14   :  { %p1444_p8 = scmp.ne.s32.totalorder %s1593_s1, %s1443_s28  ;;  %p1447_p9 = scmp.lt.u32.totalorder %s1443_s28, %s1593_s1 }
  0x16   :  { %p1449_p10 = pnand %p1447_p9, %p1444_p8 }
  0x18   :  { %1452 = shalt.err (!%p1449_p10)
}
  0x19   :  { %s1453_s6 = scalar_lea.vmem %s1519_s15, 16384  ;;  %p1458_p12 = scmp.lt.s32.totalorder %s1519_s15, %s1519_s15 }
  0x1a   :  { %p1454_p11 = scmp.ne.s32.totalorder %s1519_s15, %s1453_s6  ;;  %p1459_p13 = scmp.lt.s32.totalorder %s1453_s6, %s1453_s6 }
  0x1c   :  { %p1460_p0 = por %p1459_p13, %p1458_p12 }
  0x1e   :  { %p1461_p1 = pnand %p1460_p0, %p1454_p11 }
  0x20   :  { %1464 = shalt.err (!%p1461_p1)
}
  0x21   :  { %s1495_s0 = smov 256   ;;  %s1496_s7 = smov 16  }
  0x22   :  { %32 = dma.hbm_to_vmem [thread:$0]  %s1593_s1, 16384, %s1519_s15, [#allocation6], %s1495_s0, %s1495_s0, %s1496_s7  }
  0x23   :  { %1487 = dma.done.wait [#allocation3], 64  }
  0x24   :  { %1488 = vsyncadd [#allocation3], 4294967232 }
  0x25   :  { %1489 = dma.done.wait [#allocation6], 16384  }
  0x26   :  { %1490 = vsyncadd [#allocation6], 4294950912  ;;  %v1229_v0 = vld [vmem:[#allocation5 + $0x4] ss:$16 sps:$4 sm:$0xff]   ;;  %v1231_v1 = vld [vmem:[#allocation5 + $0xc] ss:$16 sps:$4 sm:$0xff]   ;;  %v43_v36 = vlaneseq }
  0x27   :  { %857 = vmatprep.subr.bf16.mxu0 %v1229_v0  ;;  %v1233_v2 = vld [vmem:[#allocation5] ss:$16 sps:$4 sm:$0xff]   ;;  %v1234_v3 = vld [vmem:[#allocation5 + $0x8] ss:$16 sps:$4 sm:$0xff]   ;;  %939 = vmatprep.subr.bf16.mxu1 %v1231_v1  ;;  %v1235_v4 = vld [vmem:[#allocation5 + $0x24] ss:$16 sps:$4 sm:$0xff]  }
  0x28   :  { %858 = vmatpush1.bf16.msra.mxu0 %v1233_v2  ;;  %940 = vmatpush1.bf16.msra.mxu1 %v1234_v3  ;;  %v1237_v5 = vld [vmem:[#allocation5 + $0x2c] ss:$16 sps:$4 sm:$0xff]   ;;  %v1239_v6 = vld [vmem:[#allocation5 + $0x20] ss:$16 sps:$4 sm:$0xff]   ;;  %v1240_v7 = vld [vmem:[#allocation5 + $0x28] ss:$16 sps:$4 sm:$0xff]  }
  0x29   :  { %859 = vmatprep.subr.bf16.mxu0 %v1235_v4  ;;  %941 = vmatprep.subr.bf16.mxu1 %v1237_v5  ;;  %v1241_v8 = vld [vmem:[#allocation5 + $0x44] ss:$16 sps:$4 sm:$0xff]   ;;  %v1243_v9 = vld [vmem:[#allocation5 + $0x4c] ss:$16 sps:$4 sm:$0xff]   ;;  %v1245_v10 = vld [vmem:[#allocation5 + $0x40] ss:$16 sps:$4 sm:$0xff]  }
  0x2a   :  { %v1246_v11 = vld [vmem:[#allocation5 + $0x48] ss:$16 sps:$4 sm:$0xff]   ;;  %v1247_v12 = vld [vmem:[#allocation5 + $0x64] ss:$16 sps:$4 sm:$0xff]   ;;  %v1249_v13 = vld [vmem:[#allocation5 + $0x6c] ss:$16 sps:$4 sm:$0xff]  }
  0x2b   :  { %v1251_v14 = vld [vmem:[#allocation5 + $0x60] ss:$16 sps:$4 sm:$0xff]   ;;  %v1252_v15 = vld [vmem:[#allocation5 + $0x68] ss:$16 sps:$4 sm:$0xff]   ;;  %v1253_v16 = vld [vmem:[#allocation5 + $0x84] ss:$16 sps:$4 sm:$0xff]  }
  0x2c   :  { %860 = vmatpush1.bf16.msra.mxu0 %v1239_v6  ;;  %942 = vmatpush1.bf16.msra.mxu1 %v1240_v7  ;;  %v1255_v17 = vld [vmem:[#allocation5 + $0x8c] ss:$16 sps:$4 sm:$0xff]   ;;  %v1257_v18 = vld [vmem:[#allocation5 + $0x80] ss:$16 sps:$4 sm:$0xff]   ;;  %v1258_v19 = vld [vmem:[#allocation5 + $0x88] ss:$16 sps:$4 sm:$0xff]  }
  0x2d   :  { %861 = vmatprep.subr.bf16.mxu0 %v1241_v8  ;;  %943 = vmatprep.subr.bf16.mxu1 %v1243_v9  ;;  %v1259_v20 = vld [vmem:[#allocation5 + $0xa4] ss:$16 sps:$4 sm:$0xff]   ;;  %v1261_v21 = vld [vmem:[#allocation5 + $0xac] ss:$16 sps:$4 sm:$0xff]   ;;  %v1263_v22 = vld [vmem:[#allocation5 + $0xa0] ss:$16 sps:$4 sm:$0xff]  }
  0x2e   :  { %v1264_v23 = vld [vmem:[#allocation5 + $0xa8] ss:$16 sps:$4 sm:$0xff]   ;;  %v1265_v24 = vld [vmem:[#allocation5 + $0xc4] ss:$16 sps:$4 sm:$0xff]   ;;  %v1267_v25 = vld [vmem:[#allocation5 + $0xcc] ss:$16 sps:$4 sm:$0xff]  }
  0x2f   :  { %v1269_v26 = vld [vmem:[#allocation5 + $0xc0] ss:$16 sps:$4 sm:$0xff]   ;;  %v1270_v27 = vld [vmem:[#allocation5 + $0xc8] ss:$16 sps:$4 sm:$0xff]   ;;  %v1271_v28 = vld [vmem:[#allocation5 + $0xe4] ss:$16 sps:$4 sm:$0xff]  }
  0x30   :  { %862 = vmatpush1.bf16.msra.mxu0 %v1245_v10  ;;  %944 = vmatpush1.bf16.msra.mxu1 %v1246_v11  ;;  %v1273_v29 = vld [vmem:[#allocation5 + $0xec] ss:$16 sps:$4 sm:$0xff]   ;;  %v1275_v30 = vld [vmem:[#allocation5 + $0xe0] ss:$16 sps:$4 sm:$0xff]   ;;  %v1276_v31 = vld [vmem:[#allocation5 + $0xe8] ss:$16 sps:$4 sm:$0xff]  }
  0x31   :  { %863 = vmatprep.subr.bf16.mxu0 %v1247_v12  ;;  %945 = vmatprep.subr.bf16.mxu1 %v1249_v13  ;;  %v1277_v32 = vld [vmem:[#allocation5 + $0x104] ss:$16 sps:$4 sm:$0xff]   ;;  %v1279_v33 = vld [vmem:[#allocation5 + $0x10c] ss:$16 sps:$4 sm:$0xff]   ;;  %v1281_v34 = vld [vmem:[#allocation5 + $0x100] ss:$16 sps:$4 sm:$0xff]  }
  0x32   :  { %v1282_v35 = vld [vmem:[#allocation5 + $0x108] ss:$16 sps:$4 sm:$0xff]   ;;  %v1283_v37 = vld [vmem:[#allocation5 + $0x124] ss:$16 sps:$4 sm:$0xff]   ;;  %v1285_v38 = vld [vmem:[#allocation5 + $0x12c] ss:$16 sps:$4 sm:$0xff]  }
  0x33   :  { %v1287_v39 = vld [vmem:[#allocation5 + $0x120] ss:$16 sps:$4 sm:$0xff]   ;;  %v1551_v40 = vshrl.u32 %v43_v36, 7  ;;  %v1288_v41 = vld [vmem:[#allocation5 + $0x128] ss:$16 sps:$4 sm:$0xff]   ;;  %vm1064_vm0 = vcmp.lt.s32.totalorder %v43_v36, 512 }
  0x34   :  { %864 = vmatpush1.bf16.msra.mxu0 %v1251_v14  ;;  %946 = vmatpush1.bf16.msra.mxu1 %v1252_v15  ;;  %v1289_v42 = vld [vmem:[#allocation5 + $0x144] ss:$16 sps:$4 sm:$0xff]   ;;  %v1291_v43 = vld [vmem:[#allocation5 + $0x14c] ss:$16 sps:$4 sm:$0xff]   ;;  %v1293_v44 = vld [vmem:[#allocation5 + $0x140] ss:$16 sps:$4 sm:$0xff]  }
  0x35   :  { %865 = vmatprep.subr.bf16.mxu0 %v1253_v16  ;;  %947 = vmatprep.subr.bf16.mxu1 %v1255_v17  ;;  %v1294_v45 = vld [vmem:[#allocation5 + $0x148] ss:$16 sps:$4 sm:$0xff]   ;;  %v49_v46 = vsub.s32 1, %v1551_v40  ;;  %v1295_v47 = vld [vmem:[#allocation5 + $0x164] ss:$16 sps:$4 sm:$0xff]   ;;  %v45_v1 = vsub.s32 0, %v1551_v40 }
  0x36   :  { %v1297_v48 = vld [vmem:[#allocation5 + $0x16c] ss:$16 sps:$4 sm:$0xff]   ;;  %v1299_v50 = vld [vmem:[#allocation5 + $0x160] ss:$16 sps:$4 sm:$0xff]   ;;  %v1300_v52 = vld [vmem:[#allocation5 + $0x168] ss:$16 sps:$4 sm:$0xff]  }
  0x37   :  { %v1554_v49 = vld [vmem:[#allocation2] sm:$0xf]  ;;  %v1301_v53 = vld [vmem:[#allocation5 + $0x184] ss:$16 sps:$4 sm:$0xff]   ;;  %v1305_v56 = vld [vmem:[#allocation5 + $0x180] ss:$16 sps:$4 sm:$0xff]  }
  0x38   :  { %866 = vmatpush1.bf16.msra.mxu0 %v1257_v18  ;;  %948 = vmatpush1.bf16.msra.mxu1 %v1258_v19  ;;  %v50_v51 = vrot.slane %v1554_v49, %v49_v46  ;;  %v1303_v54 = vld [vmem:[#allocation5 + $0x18c] ss:$16 sps:$4 sm:$0xff]   ;;  %v1306_v57 = vld [vmem:[#allocation5 + $0x188] ss:$16 sps:$4 sm:$0xff]   ;;  %v1307_v58 = vld [vmem:[#allocation5 + $0x1a4] ss:$16 sps:$4 sm:$0xff]   ;;  %v46_v7 = vrot.slane %v1554_v49, %v45_v1 }
  0x39   :  { %867 = vmatprep.subr.bf16.mxu0 %v1259_v20  ;;  %949 = vmatprep.subr.bf16.mxu1 %v1261_v21  ;;  %v1309_v59 = vld [vmem:[#allocation5 + $0x1ac] ss:$16 sps:$4 sm:$0xff]   ;;  %v1311_v60 = vld [vmem:[#allocation5 + $0x1a0] ss:$16 sps:$4 sm:$0xff]   ;;  %v1312_v61 = vld [vmem:[#allocation5 + $0x1a8] ss:$16 sps:$4 sm:$0xff]  }
  0x3a   :  { %v64_v55 = vpack.c.bf16 %v50_v51, %v50_v51  ;;  %v1313_v62 = vld [vmem:[#allocation5 + $0x1c4] ss:$16 sps:$4 sm:$0xff]   ;;  %v1315_v63 = vld [vmem:[#allocation5 + $0x1cc] ss:$16 sps:$4 sm:$0xff]   ;;  %v1317_v0 = vld [vmem:[#allocation5 + $0x1c0] ss:$16 sps:$4 sm:$0xff]   ;;  %v63_v13 = vpack.c.bf16 %v46_v7, %v46_v7 }
  0x3b   :  { %v1318_v2 = vld [vmem:[#allocation5 + $0x1c8] ss:$16 sps:$4 sm:$0xff]   ;;  %v1319_v3 = vld [vmem:[#allocation5 + $0x1e4] ss:$16 sps:$4 sm:$0xff]   ;;  %v1321_v4 = vld [vmem:[#allocation5 + $0x1ec] ss:$16 sps:$4 sm:$0xff]  }
  0x3c   :  { %868 = vmatpush1.bf16.msra.mxu0 %v1263_v22  ;;  %950 = vmatpush1.bf16.msra.mxu1 %v1264_v23  ;;  %v57_v5 = vsub.s32 3, %v1551_v40  ;;  %v1323_v6 = vld [vmem:[#allocation5 + $0x1e0] ss:$16 sps:$4 sm:$0xff]   ;;  %v1324_v8 = vld [vmem:[#allocation5 + $0x1e8] ss:$16 sps:$4 sm:$0xff]  }
  0x3d   :  { %869 = vmatprep.subr.bf16.mxu0 %v1265_v24  ;;  %951 = vmatprep.subr.bf16.mxu1 %v1267_v25  ;;  %v1327_v9 = vld [vmem:[#allocation5 + $0x204] ss:$16 sps:$4 sm:$0xff]   ;;  %v1330_v10 = vld [vmem:[#allocation5 + $0x20c] ss:$16 sps:$4 sm:$0xff]   ;;  %v1325_v12 = vld [vmem:[#allocation5 + $0x200] ss:$16 sps:$4 sm:$0xff]  }
  0x3e   :  { %889 = vmatprep.mubr.bf16.mxu0 %v64_v55  ;;  %971 = vmatprep.mubr.bf16.mxu1 %v64_v55  ;;  %v58_v11 = vrot.slane %v1554_v49, %v57_v5  ;;  %v1328_v14 = vld [vmem:[#allocation5 + $0x208] ss:$16 sps:$4 sm:$0xff]   ;;  %v1333_v15 = vld [vmem:[#allocation5 + $0x224] ss:$16 sps:$4 sm:$0xff]   ;;  %v1336_v16 = vld [vmem:[#allocation5 + $0x22c] ss:$16 sps:$4 sm:$0xff]  }
  0x3f   :  { %v1331_v18 = vld [vmem:[#allocation5 + $0x220] ss:$16 sps:$4 sm:$0xff]   ;;  %v1334_v19 = vld [vmem:[#allocation5 + $0x228] ss:$16 sps:$4 sm:$0xff]   ;;  %v1339_v20 = vld [vmem:[#allocation5 + $0x244] ss:$16 sps:$4 sm:$0xff]  }
  0x40   :  { %870 = vmatpush1.bf16.msra.mxu0 %v1269_v26  ;;  %952 = vmatpush1.bf16.msra.mxu1 %v1270_v27  ;;  %v66_v17 = vpack.c.bf16 %v58_v11, %v58_v11  ;;  %v1342_v21 = vld [vmem:[#allocation5 + $0x24c] ss:$16 sps:$4 sm:$0xff]   ;;  %v1337_v22 = vld [vmem:[#allocation5 + $0x240] ss:$16 sps:$4 sm:$0xff]   ;;  %v1340_v23 = vld [vmem:[#allocation5 + $0x248] ss:$16 sps:$4 sm:$0xff]  }
  0x41   :  { %871 = vmatprep.subr.bf16.mxu0 %v1271_v28  ;;  %953 = vmatprep.subr.bf16.mxu1 %v1273_v29  ;;  %v1345_v24 = vld [vmem:[#allocation5 + $0x264] ss:$16 sps:$4 sm:$0xff]   ;;  %v1348_v25 = vld [vmem:[#allocation5 + $0x26c] ss:$16 sps:$4 sm:$0xff]   ;;  %v1343_v26 = vld [vmem:[#allocation5 + $0x260] ss:$16 sps:$4 sm:$0xff]  }
  0x42   :  { %v1346_v27 = vld [vmem:[#allocation5 + $0x268] ss:$16 sps:$4 sm:$0xff]   ;;  %v1351_v28 = vld [vmem:[#allocation5 + $0x284] ss:$16 sps:$4 sm:$0xff]   ;;  %v1354_v29 = vld [vmem:[#allocation5 + $0x28c] ss:$16 sps:$4 sm:$0xff]  }
  0x43   :  { %v1376_v51 = vld [vmem:[#allocation5 + $0x308] ss:$16 sps:$4 sm:$0xff]   ;;  %v1408_v7 = vld [vmem:[#allocation5 + $0x3ac] ss:$16 sps:$4 sm:$0xff]  }
  0x44   :  { %872 = vmatpush1.bf16.msra.mxu0 %v1275_v30  ;;  %954 = vmatpush1.bf16.msra.mxu1 %v1276_v31  ;;  %v1349_v30 = vld [vmem:[#allocation5 + $0x280] ss:$16 sps:$4 sm:$0xff]   ;;  %v1352_v31 = vld [vmem:[#allocation5 + $0x288] ss:$16 sps:$4 sm:$0xff]   ;;  %v1414_v11 = vld [vmem:[#allocation5 + $0x3cc] ss:$16 sps:$4 sm:$0xff]  }
  0x45   :  { %873 = vmatprep.subr.bf16.mxu0 %v1277_v32  ;;  %955 = vmatprep.subr.bf16.mxu1 %v1279_v33  ;;  %v1357_v32 = vld [vmem:[#allocation5 + $0x2a4] ss:$16 sps:$4 sm:$0xff]   ;;  %v1360_v33 = vld [vmem:[#allocation5 + $0x2ac] ss:$16 sps:$4 sm:$0xff]   ;;  %v1382_v55 = vld [vmem:[#allocation5 + $0x328] ss:$16 sps:$4 sm:$0xff]  }
  0x48   :  { %874 = vmatpush1.bf16.msra.mxu0 %v1281_v34  ;;  %956 = vmatpush1.bf16.msra.mxu1 %v1282_v35  ;;  %v1355_v34 = vld [vmem:[#allocation5 + $0x2a0] ss:$16 sps:$4 sm:$0xff]   ;;  %v1358_v35 = vld [vmem:[#allocation5 + $0x2a8] ss:$16 sps:$4 sm:$0xff]  }
  0x49   :  { %875 = vmatprep.subr.bf16.mxu0 %v1283_v37  ;;  %957 = vmatprep.subr.bf16.mxu1 %v1285_v38  ;;  %v1363_v37 = vld [vmem:[#allocation5 + $0x2c4] ss:$16 sps:$4 sm:$0xff]   ;;  %v1366_v38 = vld [vmem:[#allocation5 + $0x2cc] ss:$16 sps:$4 sm:$0xff]  }
  0x4c   :  { %876 = vmatpush1.bf16.msra.mxu0 %v1287_v39  ;;  %958 = vmatpush1.bf16.msra.mxu1 %v1288_v41  ;;  %v1361_v39 = vld [vmem:[#allocation5 + $0x2c0] ss:$16 sps:$4 sm:$0xff]   ;;  %v1364_v41 = vld [vmem:[#allocation5 + $0x2c8] ss:$16 sps:$4 sm:$0xff]  }
  0x4d   :  { %877 = vmatprep.subr.bf16.mxu0 %v1289_v42  ;;  %959 = vmatprep.subr.bf16.mxu1 %v1291_v43  ;;  %v1369_v42 = vld [vmem:[#allocation5 + $0x2e4] ss:$16 sps:$4 sm:$0xff]   ;;  %v1372_v43 = vld [vmem:[#allocation5 + $0x2ec] ss:$16 sps:$4 sm:$0xff]  }
  0x50   :  { %878 = vmatpush1.bf16.msra.mxu0 %v1293_v44  ;;  %960 = vmatpush1.bf16.msra.mxu1 %v1294_v45  ;;  %v1367_v44 = vld [vmem:[#allocation5 + $0x2e0] ss:$16 sps:$4 sm:$0xff]   ;;  %v1370_v45 = vld [vmem:[#allocation5 + $0x2e8] ss:$16 sps:$4 sm:$0xff]  }
  0x51   :  { %879 = vmatprep.subr.bf16.mxu0 %v1295_v47  ;;  %961 = vmatprep.subr.bf16.mxu1 %v1297_v48  ;;  %v1375_v47 = vld [vmem:[#allocation5 + $0x304] ss:$16 sps:$4 sm:$0xff]   ;;  %v1378_v48 = vld [vmem:[#allocation5 + $0x30c] ss:$16 sps:$4 sm:$0xff]  }
  0x54   :  { %880 = vmatpush1.bf16.msra.mxu0 %v1299_v50  ;;  %962 = vmatpush1.bf16.msra.mxu1 %v1300_v52  ;;  %v1373_v50 = vld [vmem:[#allocation5 + $0x300] ss:$16 sps:$4 sm:$0xff]   ;;  %v1381_v52 = vld [vmem:[#allocation5 + $0x324] ss:$16 sps:$4 sm:$0xff]  }
  0x55   :  { %881 = vmatprep.subr.bf16.mxu0 %v1301_v53  ;;  %963 = vmatprep.subr.bf16.mxu1 %v1303_v54  ;;  %v1384_v53 = vld [vmem:[#allocation5 + $0x32c] ss:$16 sps:$4 sm:$0xff]   ;;  %v1379_v54 = vld [vmem:[#allocation5 + $0x320] ss:$16 sps:$4 sm:$0xff]  }
  0x58   :  { %882 = vmatpush1.bf16.msra.mxu0 %v1305_v56  ;;  %964 = vmatpush1.bf16.msra.mxu1 %v1306_v57  ;;  %v1387_v56 = vld [vmem:[#allocation5 + $0x344] ss:$16 sps:$4 sm:$0xff]   ;;  %v1390_v57 = vld [vmem:[#allocation5 + $0x34c] ss:$16 sps:$4 sm:$0xff]  }
  0x59   :  { %883 = vmatprep.subr.bf16.mxu0 %v1307_v58  ;;  %965 = vmatprep.subr.bf16.mxu1 %v1309_v59  ;;  %v1385_v58 = vld [vmem:[#allocation5 + $0x340] ss:$16 sps:$4 sm:$0xff]   ;;  %v1388_v59 = vld [vmem:[#allocation5 + $0x348] ss:$16 sps:$4 sm:$0xff]  }
  0x5c   :  { %884 = vmatpush1.bf16.msra.mxu0 %v1311_v60  ;;  %966 = vmatpush1.bf16.msra.mxu1 %v1312_v61  ;;  %v1393_v60 = vld [vmem:[#allocation5 + $0x364] ss:$16 sps:$4 sm:$0xff]   ;;  %v1396_v61 = vld [vmem:[#allocation5 + $0x36c] ss:$16 sps:$4 sm:$0xff]  }
  0x5d   :  { %885 = vmatprep.subr.bf16.mxu0 %v1313_v62  ;;  %967 = vmatprep.subr.bf16.mxu1 %v1315_v63  ;;  %v1391_v62 = vld [vmem:[#allocation5 + $0x360] ss:$16 sps:$4 sm:$0xff]   ;;  %v1394_v63 = vld [vmem:[#allocation5 + $0x368] ss:$16 sps:$4 sm:$0xff]  }
  0x60   :  { %886 = vmatpush1.bf16.msra.mxu0 %v1317_v0  ;;  %968 = vmatpush1.bf16.msra.mxu1 %v1318_v2  ;;  %v1399_v0 = vld [vmem:[#allocation5 + $0x384] ss:$16 sps:$4 sm:$0xff]   ;;  %v1402_v2 = vld [vmem:[#allocation5 + $0x38c] ss:$16 sps:$4 sm:$0xff]  }
  0x61   :  { %887 = vmatprep.subr.bf16.mxu0 %v1319_v3  ;;  %969 = vmatprep.subr.bf16.mxu1 %v1321_v4  ;;  %v1397_v3 = vld [vmem:[#allocation5 + $0x380] ss:$16 sps:$4 sm:$0xff]   ;;  %v1400_v4 = vld [vmem:[#allocation5 + $0x388] ss:$16 sps:$4 sm:$0xff]  }
  0x64   :  { %888 = vmatpush1.bf16.msra.mxu0 %v1323_v6  ;;  %970 = vmatpush1.bf16.msra.mxu1 %v1324_v8  ;;  %v1405_v6 = vld [vmem:[#allocation5 + $0x3a4] ss:$16 sps:$4 sm:$0xff]   ;;  %v1403_v8 = vld [vmem:[#allocation5 + $0x3a0] ss:$16 sps:$4 sm:$0xff]  }
  0x65   :  { %898 = vmatprep.subr.bf16.mxu0 %v1327_v9  ;;  %980 = vmatprep.subr.bf16.mxu1 %v1330_v10  ;;  %v1406_v9 = vld [vmem:[#allocation5 + $0x3a8] ss:$16 sps:$4 sm:$0xff]   ;;  %v1411_v10 = vld [vmem:[#allocation5 + $0x3c4] ss:$16 sps:$4 sm:$0xff]  }
  0x67   :  { %890 = vmatmul.mubr.bf16.vlgmr.msra.gmra.mrb[0].mxu0 %v63_v13  ;;  %972 = vmatmul.mubr.bf16.vlgmr.msra.gmra.mrb[0].mxu1 %v63_v13  ;;  %v1409_v13 = vld [vmem:[#allocation5 + $0x3c0] ss:$16 sps:$4 sm:$0xff]  }
  0x68   :  { %899 = vmatpush1.bf16.msra.mxu0 %v1325_v12  ;;  %981 = vmatpush1.bf16.msra.mxu1 %v1328_v14  ;;  %v53_v12 = vsub.s32 2, %v1551_v40  ;;  %v1412_v14 = vld [vmem:[#allocation5 + $0x3c8] ss:$16 sps:$4 sm:$0xff]  }
  0x69   :  { %900 = vmatprep.subr.bf16.mxu0 %v1333_v15  ;;  %982 = vmatprep.subr.bf16.mxu1 %v1336_v16  ;;  %v1417_v15 = vld [vmem:[#allocation5 + $0x3e4] ss:$16 sps:$4 sm:$0xff]   ;;  %v1420_v16 = vld [vmem:[#allocation5 + $0x3ec] ss:$16 sps:$4 sm:$0xff]  }
  0x6a   :  { %930 = vmatprep.mubr.bf16.mxu0 %v66_v17  ;;  %1012 = vmatprep.mubr.bf16.mxu1 %v66_v17  ;;  %v54_v17 = vrot.slane %v1554_v49, %v53_v12 }
  0x6c   :  { %901 = vmatpush1.bf16.msra.mxu0 %v1331_v18  ;;  %983 = vmatpush1.bf16.msra.mxu1 %v1334_v19  ;;  %v1415_v18 = vld [vmem:[#allocation5 + $0x3e0] ss:$16 sps:$4 sm:$0xff]   ;;  %v1418_v19 = vld [vmem:[#allocation5 + $0x3e8] ss:$16 sps:$4 sm:$0xff]  }
  0x6d   :  { %902 = vmatprep.subr.bf16.mxu0 %v1339_v20  ;;  %984 = vmatprep.subr.bf16.mxu1 %v1342_v21  ;;  %v65_v20 = vpack.c.bf16 %v54_v17, %v54_v17  ;;  %v195_v21 = vld [vmem:[%s1594_s2] sm:$0xf]  ;;  %s1498_s2 = smov [#allocation7]  }
  0x6e   :  { %v844_v49 = vrot.slane %v195_v21, %v49_v46  ;;  %s1073_s11 = sshll.u32 %s1498_s2, 4  ;;  %s1074_s11 = int_to_ptr.vmem [resolvable:$true] %s1073_s11 }
  0x6f   :  { %s1465_s12 = scalar_lea.vmem %s1074_s11, 64  ;;  %p1470_p3 = scmp.lt.s32.totalorder %s1074_s11, %s1074_s11 }
  0x70   :  { %903 = vmatpush1.bf16.msra.mxu0 %v1337_v22  ;;  %985 = vmatpush1.bf16.msra.mxu1 %v1340_v23  ;;  %v840_v22 = vrot.slane %v195_v21, %v45_v1  ;;  %v848_v23 = vrot.slane %v195_v21, %v53_v12  ;;  %p1466_p2 = scmp.ne.s32.totalorder %s1074_s11, %s1465_s12  ;;  %p1471_p4 = scmp.lt.s32.totalorder %s1465_s12, %s1465_s12 }
  0x71   :  { %904 = vmatprep.subr.bf16.mxu0 %v1345_v24  ;;  %986 = vmatprep.subr.bf16.mxu1 %v1348_v25  ;;  %v852_v24 = vrot.slane %v195_v21, %v57_v5 }
  0x72   :  { %p1472_p5 = por %p1471_p4, %p1470_p3 }
  0x74   :  { %905 = vmatpush1.bf16.msra.mxu0 %v1343_v26  ;;  %987 = vmatpush1.bf16.msra.mxu1 %v1346_v27  ;;  %v1497_v27 = vmov 1966171168   ;;  %p1473_p6 = pnand %p1472_p5, %p1466_p2 }
  0x75   :  { %906 = vmatprep.subr.bf16.mxu0 %v1351_v28  ;;  %988 = vmatprep.subr.bf16.mxu1 %v1354_v29  ;;  %v1040_v28 = vunpack.c.l.s4 %v1497_v27 }
  0x78   :  { %907 = vmatpush1.bf16.msra.mxu0 %v1349_v30  ;;  %989 = vmatpush1.bf16.msra.mxu1 %v1352_v31 }
  0x79   :  { %908 = vmatprep.subr.bf16.mxu0 %v1357_v32  ;;  %990 = vmatprep.subr.bf16.mxu1 %v1360_v33 }
  0x7c   :  { %909 = vmatpush1.bf16.msra.mxu0 %v1355_v34  ;;  %991 = vmatpush1.bf16.msra.mxu1 %v1358_v35 }
  0x7d   :  { %910 = vmatprep.subr.bf16.mxu0 %v1363_v37  ;;  %992 = vmatprep.subr.bf16.mxu1 %v1366_v38 }
  0x80   :  { %911 = vmatpush1.bf16.msra.mxu0 %v1361_v39  ;;  %993 = vmatpush1.bf16.msra.mxu1 %v1364_v41 }
  0x81   :  { %912 = vmatprep.subr.bf16.mxu0 %v1369_v42  ;;  %994 = vmatprep.subr.bf16.mxu1 %v1372_v43  ;;  %v1041_v42 = vunpack.c.0.s8 %v1040_v28 }
  0x84   :  { %913 = vmatpush1.bf16.msra.mxu0 %v1367_v44  ;;  %995 = vmatpush1.bf16.msra.mxu1 %v1370_v45 }
  0x85   :  { %914 = vmatprep.subr.bf16.mxu0 %v1375_v47  ;;  %996 = vmatprep.subr.bf16.mxu1 %v1378_v48 }
  0x88   :  { %915 = vmatpush1.bf16.msra.mxu0 %v1373_v50  ;;  %997 = vmatpush1.bf16.msra.mxu1 %v1376_v51 }
  0x89   :  { %916 = vmatprep.subr.bf16.mxu0 %v1381_v52  ;;  %998 = vmatprep.subr.bf16.mxu1 %v1384_v53  ;;  %v1044_v52 = vsub.s32 %v1041_v42, %v1551_v40 }
  0x8c   :  { %917 = vmatpush1.bf16.msra.mxu0 %v1379_v54  ;;  %999 = vmatpush1.bf16.msra.mxu1 %v1382_v55 }
  0x8d   :  { %918 = vmatprep.subr.bf16.mxu0 %v1387_v56  ;;  %1000 = vmatprep.subr.bf16.mxu1 %v1390_v57 }
  0x90   :  { %919 = vmatpush1.bf16.msra.mxu0 %v1385_v58  ;;  %1001 = vmatpush1.bf16.msra.mxu1 %v1388_v59 }
  0x91   :  { %920 = vmatprep.subr.bf16.mxu0 %v1393_v60  ;;  %1002 = vmatprep.subr.bf16.mxu1 %v1396_v61 }
  0x94   :  { %921 = vmatpush1.bf16.msra.mxu0 %v1391_v62  ;;  %1003 = vmatpush1.bf16.msra.mxu1 %v1394_v63 }
  0x95   :  { %922 = vmatprep.subr.bf16.mxu0 %v1399_v0  ;;  %1004 = vmatprep.subr.bf16.mxu1 %v1402_v2 }
  0x98   :  { %923 = vmatpush1.bf16.msra.mxu0 %v1397_v3  ;;  %1005 = vmatpush1.bf16.msra.mxu1 %v1400_v4 }
  0x99   :  { %924 = vmatprep.subr.bf16.mxu0 %v1405_v6  ;;  %1006 = vmatprep.subr.bf16.mxu1 %v1408_v7 }
  0x9c   :  { %925 = vmatpush1.bf16.msra.mxu0 %v1403_v8  ;;  %1007 = vmatpush1.bf16.msra.mxu1 %v1406_v9 }
  0x9d   :  { %926 = vmatprep.subr.bf16.mxu0 %v1411_v10  ;;  %1008 = vmatprep.subr.bf16.mxu1 %v1414_v11 }
  0xa0   :  { %927 = vmatpush1.bf16.msra.mxu0 %v1409_v13  ;;  %1009 = vmatpush1.bf16.msra.mxu1 %v1412_v14 }
  0xa1   :  { %928 = vmatprep.subr.bf16.mxu0 %v1417_v15  ;;  %1010 = vmatprep.subr.bf16.mxu1 %v1420_v16 }
  0xa4   :  { %929 = vmatpush1.bf16.msra.mxu0 %v1415_v18  ;;  %1011 = vmatpush1.bf16.msra.mxu1 %v1418_v19 }
  0xa7   :  { %931 = vmatmul.mubr.bf16.vlgmr.msra.gmra.mrb[0].mxu0 %v65_v20  ;;  %1013 = vmatmul.mubr.bf16.vlgmr.msra.gmra.mrb[0].mxu1 %v65_v20 }
 0x17a   :  { %v932_v25 = vpop.f32.mrb[0].mxu0  ;;  %v1014_v26 = vpop.f32.mrb[0].mxu1 }
 0x17b   :  { %v1211_v29 = vadd.f32 %v932_v25, %v840_v22  ;;  %v1213_v30 = vadd.f32 %v1014_v26, %v848_v23  ;;  %v934_v31 = vpop.f32.mrb[1].mxu0  ;;  %v1016_v32 = vpop.f32.mrb[1].mxu1 }
 0x17c   :  { %v1212_v33 = vadd.f32 %v934_v31, %v844_v49  ;;  %v1214_v34 = vadd.f32 %v1016_v32, %v852_v24  ;;  %v936_v35 = vpop.f32.mrb[2].mxu0  ;;  %v1018_v37 = vpop.f32.mrb[2].mxu1 }
 0x17d   :  { %v1021_v1 = vmax.f32 %v1211_v29, 0.0  ;;  %v1023_v38 = vmax.f32 %v1213_v30, 0.0  ;;  %v937_v39 = vpop.f32.mrb[3].mxu0  ;;  %v1019_v41 = vpop.f32.mrb[3].mxu1 }
 0x17e   :  { %v1022_v46 = vmax.f32 %v1212_v33, 0.0  ;;  %v1024_v43 = vmax.f32 %v1214_v34, 0.0 }
 0x17f   :  { %v1025_v5 = vmin.f32 %v1021_v1, 6.0  ;;  %v1027_v44 = vmin.f32 %v1023_v38, 6.0 }
 0x180   :  { %v1026_v45 = vmin.f32 %v1022_v46, 6.0  ;;  %v1028_v47 = vmin.f32 %v1024_v43, 6.0 }
 0x181   :  { %v1029_v48 = vmul.f32 0.16666667, %v1025_v5  ;;  %v1031_v50 = vmul.f32 0.16666667, %v1027_v44 }
 0x182   :  { %v1030_v51 = vmul.f32 0.16666667, %v1026_v45  ;;  %v1032_v53 = vmul.f32 0.16666667, %v1028_v47 }
 0x184   :  { %v1037_v54 = vcombine.low %v1029_v48, %v1030_v51  ;;  %v1038_v55 = vcombine.low %v1031_v50, %v1032_v53 }
 0x186   :  { %v1045_v56 = vrot.slane %v1037_v54, %v1044_v52  ;;  %v1052_v57 = vrot.slane %v1038_v55, %v1044_v52 }
 0x188   :  { %v1053_v58 = vcombine.low %v1045_v56, %v1052_v57 }
 0x18a   :  { %v1060_v59 = vrot.slane %v1053_v58, %v1044_v52 }
 0x18c   :  { %1066 = vst.msk [vmem:[#allocation7] sm:$0xf] %vm1064_vm0, %v1060_v59 }
 0x18d   :  { %1476 = shalt.err (!%p1473_p6)
}
 0x18e   :  { %s1477_s15 = scalar_lea.hbm %s1595_s3, 64 }
 0x18f   :  { %p1478_p7 = scmp.ne.s32.totalorder %s1595_s3, %s1477_s15  ;;  %p1481_p8 = scmp.lt.u32.totalorder %s1477_s15, %s1595_s3 }
 0x191   :  { %p1483_p9 = pnand %p1481_p8, %p1478_p7 }
 0x193   :  { %1486 = shalt.err (!%p1483_p9)
}
 0x194   :  { %1076 = dma.vmem_to_hbm [thread:$0]  %s1074_s11, 64, %s1595_s3, [#allocation4]  }
 0x195   :  { %1491 = dma.done.wait [#allocation4], 64  }
 0x196   :  { %1492 = vsyncadd [#allocation4], 4294967232 }
 0x197   :  { %1080 = vsyncpa [#allocation3], 1 }
 0x198   :  { %1081 = vsyncpa [#allocation6], 1 }
 0x199   :  { %1082 = vsyncpa [#allocation4], 1 }

</bundles_post_ra>
